<compile_context>
chip_gen: v7x
topology: tpu7x:2x2x1
jax: 0.10.0
libtpu: 0.0.40
codegen_flags: <defaults>
</compile_context>

<pallas_src>
import math
import functools

import jax
import jax.numpy as jnp
from jax.experimental import pallas as pl
from jax.experimental.pallas import tpu as pltpu


def _round_up(n, m):
    return ((n + m - 1) // m) * m


# --------------------------------------------------------------------------
# tiling choices
# --------------------------------------------------------------------------
_N_SPLIT = 2  # leading "parallel" axis: both TensorCores on v7x, harmless on 1-TC chips


def _choose_hw_tiling(HW, n_split, max_tile=2048):
    """Lane tile (multiple of 128, up to 2048), steps per split, padded HW."""
    tile = min(max_tile, _round_up(pl.cdiv(HW, n_split), 128))
    n_h = pl.cdiv(HW, n_split * tile)
    return tile, n_h, n_split * n_h * tile


def _choose_class_tile(n_classes, max_tile=1024):
    """Class tile: multiple of 256 (MXU-width on v6e/v7x, 2x128 on v5e);
    prefer >= 2 balanced tiles so the v7x megacore has work on both cores."""
    tn = min(max_tile, _round_up(n_classes, 256))
    while tn > 256 and _round_up(n_classes, tn) // tn < 2:
        tn //= 2
    return tn, _round_up(n_classes, tn)


# --------------------------------------------------------------------------
# Kernel 1: AdaptiveAvgPool2d(1) as a streaming per-row sum over HW.
#   x:    (B*Cin, HW_pad) f32, tiled (B*Cin, hw_tile); sublane-dense, no transpose
#   part: (n_split, B*Cin, 1) f32 per-split partial sums (output-as-accumulator)
# --------------------------------------------------------------------------
def pool_sum_kernel(x_ref, part_ref):
    @pl.when(pl.program_id(1) == 0)
    def _():
        part_ref[...] = jnp.zeros_like(part_ref)

    part_ref[...] += jnp.sum(x_ref[...], axis=-1, keepdims=True).reshape(part_ref.shape)


# --------------------------------------------------------------------------
# Kernel 2: ArcMarginProduct, tiled over (padded) class blocks.
#   xn:    (Bp, FC)  bf16  L2-normalized embedding (batch padded to sublanes)
#   wnt:   (FC, NCp) bf16  pre-normalized, pre-transposed ArcFace weight, tile (FC, tn)
#   label: (Bp, 1)   int32 (padded rows = -1, never match)
#   out:   (Bp, NCp) f32 logits, tile (Bp, tn)
# --------------------------------------------------------------------------
def arcface_kernel(xn_ref, wnt_ref, label_ref, out_ref,
                   *, cos_m, sin_m, th, mm, scale):
    j = pl.program_id(0)
    tn = out_ref.shape[1]

    cosine = jnp.dot(xn_ref[...], wnt_ref[...],
                     preferred_element_type=jnp.float32)              # (Bp, tn)

    # clamp to avoid NaN when |cosine| rounds above 1.0
    sine = jnp.sqrt(jnp.maximum(1.0 - cosine * cosine, 0.0))
    phi = cosine * cos_m - sine * sin_m
    phi = jnp.where(cosine > th, phi, cosine - mm)                     # easy_margin=False

    # one_hot select via a single vselect on this class tile (ls_eps = 0.0)
    cls_ids = j * tn + jax.lax.broadcasted_iota(jnp.int32, cosine.shape, 1)
    is_target = cls_ids == label_ref[...]                              # (Bp,1) broadcast
    out_ref[...] = jnp.where(is_target, phi, cosine) * scale


# --------------------------------------------------------------------------
# One-time parameter preprocessing (NOT per forward call).
# --------------------------------------------------------------------------
def fold_params(params, *, bn_eps=1e-5, norm_eps=1e-12, max_class_tile=1024):
    NC, FC = params["warc"].shape

    # BatchNorm1d (eval) + fc bias folded into the FC weight/bias:
    s = params["gamma"] * jax.lax.rsqrt(params["rvar"] + bn_eps)        # (1, FC)
    w_eff = params["wfc"].T * s                                         # (Cf, FC) f32
    b_eff = (params["bfc"] - params["rmean"]) * s + params["beta"]      # (1, FC)  f32

    # ArcFace weight: row-normalize, transpose to (FC, NC), pad classes, bf16:
    warc = params["warc"]
    wss = jnp.sum(warc * warc, axis=-1, keepdims=True)
    w_n = warc * jax.lax.rsqrt(jnp.maximum(wss, norm_eps * norm_eps))
    tn, NC_pad = _choose_class_tile(NC, max_class_tile)
    wnt = jnp.pad(w_n.T.astype(jnp.bfloat16), ((0, 0), (0, NC_pad - NC)))  # (FC, NC_pad)

    return dict(wc=params["wc"], bc=params["bc"], w_eff=w_eff, b_eff=b_eff,
                wnt=wnt, class_tile=tn, n_classes=NC, norm_eps=norm_eps)


# --------------------------------------------------------------------------
# Forward
# --------------------------------------------------------------------------
def shopee_forward(image_nchw, label, folded, *, margin=0.5, scale=30.0):
    B, Cin, H, W = image_nchw.shape
    HW = H * W
    FC = folded["w_eff"].shape[1]
    NC = folded["n_classes"]
    NC_pad = folded["wnt"].shape[1]
    tn = folded["class_tile"]
    norm_eps = folded["norm_eps"]

    # ---- Kernel 1: global average pool as a streaming lane reduction ----
    rows = B * Cin
    x = image_nchw.reshape(rows, HW)            # sublane-dense, no NCHW->NHWC transpose
    hw_tile, n_h, HW_pad = _choose_hw_tiling(HW, _N_SPLIT)
    if HW_pad != HW:
        # TODO(synk): zero-padding costs one extra HBM pass; a real input pipeline
        # should deliver 128*n_split-aligned HW (and ideally bf16/uint8 pixels).
        x = jnp.pad(x, ((0, 0), (0, HW_pad - HW)))

    x_block_bytes = rows * hw_tile * x.dtype.itemsize
    k1_vmem = int(min(48 << 20, max(16 << 20, 4 * x_block_bytes)))

    part = pl.pallas_call(
        pool_sum_kernel,
        out_shape=jax.ShapeDtypeStruct((_N_SPLIT, rows, 1), jnp.float32),
        grid=(_N_SPLIT, n_h),
        in_specs=[pl.BlockSpec((rows, hw_tile), lambda s, h: (0, s * n_h + h))],
        out_specs=pl.BlockSpec((1, rows, 1), lambda s, h: (s, 0, 0)),
        compiler_params=pltpu.CompilerParams(
            dimension_semantics=("parallel", "arbitrary"),
            vmem_limit_bytes=k1_vmem),
    )(x)

    # ---- tiny epilogue in plain XLA (B x 32-ish matmuls, negligible bytes) ----
    pooled = (jnp.sum(part[:, :, 0], axis=0) / HW).reshape(B, Cin)      # mean over true HW
    # TODO(synk): timm backbone stand-in: 1x1 conv (pool-before-conv exact by linearity).
    feat = pooled @ folded["wc"] + folded["bc"]                          # (B, Cf)
    # dropout(p=0.1) -> identity in eval; Linear + BatchNorm1d folded:
    emb = feat @ folded["w_eff"] + folded["b_eff"]                       # (B, FC)
    inv_n = jax.lax.rsqrt(jnp.maximum(
        jnp.sum(emb * emb, axis=-1, keepdims=True), norm_eps * norm_eps))
    xn = (emb * inv_n).astype(jnp.bfloat16)                              # F.normalize

    # pad batch to full sublanes so kernel-2 logits stores are unmasked
    Bp = _round_up(max(B, 8), 8)
    xn = jnp.pad(xn, ((0, Bp - B), (0, 0)))
    lab = jnp.pad(label.reshape(B, 1).astype(jnp.int32), ((0, Bp - B), (0, 0)),
                  constant_values=-1)

    # ---- Kernel 2: ArcFace head, tiled over padded class blocks ----
    n_nc = NC_pad // tn
    k2_need = FC * tn * 2 + Bp * tn * 4 + Bp * FC * 2
    k2_vmem = int(min(48 << 20, max(16 << 20, 4 * k2_need)))

    k2 = functools.partial(
        arcface_kernel,
        cos_m=math.cos(margin), sin_m=math.sin(margin),
        th=math.cos(math.pi - margin), mm=math.sin(math.pi - margin) * margin,
        scale=scale)
    logits = pl.pallas_call(
        k2,
        out_shape=jax.ShapeDtypeStruct((Bp, NC_pad), jnp.float32),
        grid=(n_nc,),
        in_specs=[
            pl.BlockSpec((Bp, FC), lambda j: (0, 0)),
            pl.BlockSpec((FC, tn), lambda j: (0, j)),
            pl.BlockSpec((Bp, 1), lambda j: (0, 0)),
        ],
        out_specs=pl.BlockSpec((Bp, tn), lambda j: (0, j)),
        compiler_params=pltpu.CompilerParams(
            dimension_semantics=("parallel",),          # megacore over class tiles
            vmem_limit_bytes=k2_vmem),
    )(xn, folded["wnt"], lab)

    return logits[:B, :NC]


# --------------------------------------------------------------------------
# Params / pure-JAX reference
# --------------------------------------------------------------------------
def init_params(key, Cin, Cf, FC, NC):
    k_conv, k_fc, k_arc = jax.random.split(key, 3)
    wc = jax.random.normal(k_conv, (Cin, Cf), jnp.float32) * math.sqrt(2.0 / (Cin + Cf))
    bc = jnp.zeros((1, Cf), jnp.float32)
    wfc = jax.random.normal(k_fc, (FC, Cf), jnp.float32) * math.sqrt(2.0 / (Cf + FC))
    bfc = jnp.zeros((1, FC), jnp.float32)
    gamma = jnp.ones((1, FC), jnp.float32)
    beta = jnp.zeros((1, FC), jnp.float32)
    rmean = jnp.zeros((1, FC), jnp.float32)
    rvar = jnp.ones((1, FC), jnp.float32)
    lim = math.sqrt(6.0 / (FC + NC))
    warc = jax.random.uniform(k_arc, (NC, FC), jnp.float32, -lim, lim)
    return dict(wc=wc, bc=bc, wfc=wfc, bfc=bfc, gamma=gamma, beta=beta,
                rmean=rmean, rvar=rvar, warc=warc)


def reference_forward(image, label, params, *, margin=0.5, scale=30.0,
                      bn_eps=1e-5, norm_eps=1e-12):
    B, Cin, H, W = image.shape
    pooled = image.reshape(B, Cin, H * W).mean(axis=-1)
    feat = pooled @ params["wc"] + params["bc"]
    x = feat @ params["wfc"].T + params["bfc"]
    x = (x - params["rmean"]) * jax.lax.rsqrt(params["rvar"] + bn_eps) \
        * params["gamma"] + params["beta"]
    xn = x / jnp.maximum(jnp.linalg.norm(x, axis=-1, keepdims=True), norm_eps)
    w = params["warc"]
    wn = w / jnp.maximum(jnp.linalg.norm(w, axis=-1, keepdims=True), norm_eps)
    cosine = xn @ wn.T
    sine = jnp.sqrt(jnp.clip(1.0 - cosine * cosine, 0.0, 1.0))
    phi = cosine * math.cos(margin) - sine * math.sin(margin)
    phi = jnp.where(cosine > math.cos(math.pi - margin), phi,
                    cosine - math.sin(math.pi - margin) * margin)
    one_hot = jax.nn.one_hot(label, w.shape[0], dtype=cosine.dtype)
    return (one_hot * phi + (1.0 - one_hot) * cosine) * scale


if __name__ == "__main__":
    B, Cin, H, W = 2, 4, 96, 96   # HW=9216 -> padded to 12288, 2x3 grid steps
    Cf = 32                       # backbone in_features (stand-in)
    FC = 32                       # fc_dim (embedding size)
    NC = 1000                     # n_classes -> padded to 1024, 2 class tiles of 512

    key = jax.random.PRNGKey(0)
    k_img, k_lab, k_par = jax.random.split(key, 3)

    image = jax.random.normal(k_img, (B, Cin, H, W), jnp.float32)
    label = jax.random.randint(k_lab, (B,), 0, NC, jnp.int32)
    params = init_params(k_par, Cin, Cf, FC, NC)

    folded = fold_params(params)          # one-time preprocessing (not per forward)
    logits = shopee_forward(image, label, folded, margin=0.5, scale=30.0)
    logits = jax.block_until_ready(logits)

    assert logits.shape == (B, NC) and logits.dtype == jnp.float32
    assert bool(jnp.all(jnp.isfinite(logits)))

    ref = reference_forward(image, label, params, margin=0.5, scale=30.0)
    err = float(jnp.max(jnp.abs(logits - ref)))
    # bf16 embedding / ArcFace weight -> ~1e-2-level cosine error, scaled by 30
    assert err < 0.5, f"max abs error vs f32 reference: {err}"
    print("KERNEL_OK")
</pallas_src>

<mosaic_0001>
module attributes {stable_mosaic.version = 11 : i64} {
  func.func @pool_sum_kernel(%arg0: i32, %arg1: i32, %arg2: memref<8x2048xf32, #tpu.memory_space<vmem>>, %arg3: memref<1x8x1xf32, #tpu.memory_space<vmem>>) attributes {dimension_semantics = [#tpu.dimension_semantics<parallel>, #tpu.dimension_semantics<arbitrary>], iteration_bounds = array<i64: 2, 3>, scalar_prefetch = 0 : i64, scratch_operands = 0 : i64, tpu.core_type = #tpu.core_type<tc>, window_params = [{transform_indices = @transform_0, window_bounds = array<i64: 8, 2048>}, {transform_indices = @transform_1, window_bounds = array<i64: 1, 8, 1>}]} {
    %c0_i32 = arith.constant 0 : i32
    %0 = arith.cmpi eq, %arg1, %c0_i32 : i32
    %1 = arith.extui %0 : i1 to i32
    %c0_i32_0 = arith.constant 0 : i32
    %2 = arith.cmpi ne, %1, %c0_i32_0 : i32
    scf.if %2 {
      %cst_8 = arith.constant 0.000000e+00 : f32
      %10 = vector.broadcast %cst_8 : f32 to vector<1x8x1xf32>
      %c0_9 = arith.constant 0 : index
      %c0_10 = arith.constant 0 : index
      %c0_11 = arith.constant 0 : index
      %11 = vector.load %arg3[%c0_9, %c0_10, %c0_11] : memref<1x8x1xf32, #tpu.memory_space<vmem>>, vector<1x8x1xf32>
      tpu.vector_store %arg3[%c0_9, %c0_10, %c0_11], %10 {strides = array<i32>} : memref<1x8x1xf32, #tpu.memory_space<vmem>>, vector<1x8x1xf32>,
    } else {
    }
    %c0 = arith.constant 0 : index
    %c0_1 = arith.constant 0 : index
    %c0_2 = arith.constant 0 : index
    %3 = vector.load %arg3[%c0, %c0_1, %c0_2] : memref<1x8x1xf32, #tpu.memory_space<vmem>>, vector<1x8x1xf32>
    %c0_3 = arith.constant 0 : index
    %c0_4 = arith.constant 0 : index
    %4 = vector.load %arg2[%c0_3, %c0_4] : memref<8x2048xf32, #tpu.memory_space<vmem>>, vector<8x2048xf32>
    %cst = arith.constant dense<0.000000e+00> : vector<8xf32>
    %5 = vector.multi_reduction <add>, %4, %cst [1] : vector<8x2048xf32> to vector<8xf32>
    %6 = vector.shape_cast %5 : vector<8xf32> to vector<8x1xf32>
    %7 = vector.shape_cast %6 : vector<8x1xf32> to vector<1x8x1xf32>
    %8 = arith.addf %3, %7 : vector<1x8x1xf32>
    %c0_5 = arith.constant 0 : index
    %c0_6 = arith.constant 0 : index
    %c0_7 = arith.constant 0 : index
    %9 = vector.load %arg3[%c0_5, %c0_6, %c0_7] : memref<1x8x1xf32, #tpu.memory_space<vmem>>, vector<1x8x1xf32>
    tpu.vector_store %arg3[%c0_5, %c0_6, %c0_7], %8 {strides = array<i32>} : memref<1x8x1xf32, #tpu.memory_space<vmem>>, vector<1x8x1xf32>,
    return
  }
  func.func @transform_0(%arg0: i32, %arg1: i32) -> (i32, i32) {
    %c3_i32 = arith.constant 3 : i32
    %0 = arith.muli %arg0, %c3_i32 : i32
    %1 = arith.addi %0, %arg1 : i32
    %c0_i32 = arith.constant 0 : i32
    %c0_i32_0 = arith.constant 0 : i32
    return %c0_i32, %1 : i32, i32
  }
  func.func @transform_1(%arg0: i32, %arg1: i32) -> (i32, i32, i32) {
    %c0_i32 = arith.constant 0 : i32
    %c0_i32_0 = arith.constant 0 : i32
    %c0_i32_1 = arith.constant 0 : i32
    return %arg0, %c0_i32, %c0_i32_0 : i32, i32, i32
  }
}

</mosaic_0001>

<bundles_post_ra>
// kernel: tpu_custom_call.1
= control target key start
LH: loop header
LB: loop body
LE: loop exit
PB: predicated region body
PF: predicated region fallthrough
CT: control target
= control target key end

     0   :  { %6 = vsyncpa [#allocation3], 0  ;;  %s641_s0 = inlined_call_operand.hbm [shape: f32[8,12288], index: 0, kind: input, shape index: {}]   ;;  %s642_s1 = inlined_call_operand.vmem [shape: f32[2,8,1], index: 1, kind: output, shape index: {}]  }
   0x1   :  { %8 = vsyncpa [#allocation3 + $0x1], 0  ;;  %s471_s6 = smov 0   ;;  %s473_s7 = smov 0  }
   0x2   :  { %s475_s8 = smov 0   ;;  %s477_s9 = smov 0  }
   0x3   :  { %s479_s10 = smov 0   ;;  %s481_s11 = smov 0  }
   0x4   :  { %s483_s12 = smov 0   ;;  %s485_s13 = smov 0  }
   0x5 LB: > { %s275_s14 = sadd.s32 4294967295, %s457_s13   ;;  %s23_s15 = sadd.s32 1, %s449_s11  ;;  %s457_s13 = sphi %s485_s13, %s14_s13   ;;  %s453_s12 = sphi %s483_s12, %s654_s12   ;;  %s449_s11 = sphi %s481_s11, %s653_s11   ;;  %s445_s10 = sphi %s479_s10, %s652_s10   ;;  %s441_s9 = sphi %s477_s9, %s651_s9   ;;  %s437_s8 = sphi %s475_s8, %s650_s8   ;;  %s433_s7 = sphi %s473_s7, %s649_s7   ;;  %s429_s6 = sphi %s471_s6, %s648_s6  }
   0x6   : > { %p24_p0 = scmp.ge.s32.totalorder %s23_s15, 3  ;;  %s26_s16 = sadd.s32 1, %s453_s12 }
   0x7   : > { %s30_s17 = smul.u32 3, %s453_s12  ;;  %s37_s18 = sadd.s32 1, %s437_s8 }
   0x8   : > { %s656_s15 = smov (%p24_p0, %s23_s15), 0  ;;  %s658_s16 = smov (!%p24_p0, %s26_s16), %s453_s12 }
   0x9   : > { %s31_s19 = sadd.s32 %s449_s11, %s30_s17  ;;  %p44_p1 = scmp.ne.s32.totalorder %s437_s8, %s433_s7 }
   0xa   : > { %p28_p2 = scmp.ge.s32.totalorder %s658_s16, 2  ;;  %p45_p3 = scmp.eq.s32.totalorder %s457_s13, 0 }
   0xb   : > { %p50_p4 = scmp.ne.s32.totalorder %s433_s7, %s429_s6  ;;  %p51_p5 = scmp.eq.s32.totalorder %s275_s14, 0 }
   0xc   : > { %s660_s16 = smov (%p28_p2, %s658_s16), 0  ;;  %p524_p6 = por %p45_p3, %p44_p1 }
   0xd   : > { %p528_p7 = por %p51_p5, %p50_p4  ;;  %s32_s22 = smul.u32 3, %s660_s16 }
   0xe   : > { %p295_p8 = scmp.lt.s32.totalorder %s457_s13, 6  ;;  %s100_s23 = sand.u32 1, %s437_s8  }
   0xf   : > { %s33_s24 = sadd.s32 %s32_s22, %s656_s15  ;;  %s279_s26 = sshll.u32 %s100_s23, 7 }
  0x10   : > { %s34_s25 = ssub.s32 %s31_s19, %s33_s24  ;;  %s288_s27 = sshll.u32 %s31_s19, 11 }
  0x11   : > { %p35_p9 = scmp.eq.s32.totalorder %s34_s25, 0  ;;  %s104_s28 = scalar_lea.vmem [#allocation2], %s279_s26 }
  0x12   : > { %s114_s29 = sshll.u32 %s104_s28, 4  ;;  %s542_s4 = scalar_lea.hbm %s641_s0, %s288_s27  ;;  %s544_s29 = int_to_ptr.vmem [resolvable:$true] %s114_s29 }
  0x13   : > { %s537_s30 = scalar_select %p35_p9, %s437_s8, %s37_s18  }
  0x14   : > { %p548_p10 = pnand %p295_p8, %p524_p6  ;;  %s101_s6 = scalar_lea.sflag [#allocation3], %s100_s23 }
  0x15   : > { %s361_s14 = scalar_lea.hbm %s542_s4, 2048  ;;  %s366_s19 = scalar_lea.hbm %s641_s0, 12288 }
  0x16   : > { %p362_p13 = scmp.ne.s32.totalorder %s542_s4, %s361_s14  ;;  %p363_p0 = pneg %p548_p10 }
  0x17   : > { %p367_p3 = scmp.lt.u32.totalorder %s542_s4, %s641_s0  ;;  %p368_p4 = scmp.lt.u32.totalorder %s366_s19, %s361_s14 }
  0x18   : > { %p364_p1 = pnand %p363_p0, %p362_p13  ;;  %p370_p6 = scmp.lt.u32.totalorder %s361_s14, %s542_s4 }
  0x19   : > { %p369_p5 = por %p368_p4, %p367_p3 }
  0x1a   : > { %p365_p2 = pneg %p364_p1 }
  0x1b   : > { %p371_p8 = por %p370_p6, %p369_p5 }
  0x1d   : > { %p372_p9 = pnand %p371_p8, %p365_p2 }
  0x1f   : > { %375 = shalt.err (!%p372_p9)
}
  0x20   : > { %s376_s23 = scalar_lea.vmem %s544_s29, 2048  ;;  %s459_s24 = smov [#allocation2]  }
  0x21   : > { %p377_p13 = scmp.ne.s32.totalorder %s544_s29, %s376_s23  ;;  %s381_s25 = sshll.u32 %s459_s24, 4  ;;  %s382_s25 = int_to_ptr.vmem [resolvable:$false] %s381_s25 }
  0x22   : > { %s383_s26 = scalar_lea.vmem %s382_s25, 4096  ;;  %p384_p12 = scmp.lt.s32.totalorder %s544_s29, %s382_s25 }
  0x23   : > { %p379_p1 = pnand %p377_p13, %p363_p0  ;;  %p385_p3 = scmp.lt.s32.totalorder %s383_s26, %s376_s23 }
  0x25   : > { %p380_p11 = pneg %p379_p1  ;;  %p386_p4 = por %p385_p3, %p384_p12 }
  0x27   : > { %p387_p5 = pnand %p386_p4, %p380_p11 }
  0x29   : > { %390 = shalt.err (!%p387_p5)
}
  0x2a   : > { %294 = dma.hbm_to_vmem [thread:$0]  (!%p548_p10), %s542_s4, 2048, %s544_s29, %s101_s6  }
  0x2b   : > { %p646_p2 = scmp.lt.s32.totalorder %s457_s13, 7  ;;  %p647_p6 = scmp.ge.s32.totalorder %s457_s13, 1 }
  0x2d   : > { %p120_p0 = pnand %p647_p6, %p646_p2 }
  0x2e   : > { %s125_s27 = sand.u32 (!%p120_p0), 1, %s433_s7  }
  0x2f   : > { %123 = sbr.rel (%p120_p0) target bundleno = 240 (0xf0), region = 24  ;;  %s283_s28 = sshll.u32 (!%p120_p0), %s125_s27, 7 }
  0x30   : > { %s126_s2 = scalar_lea.sflag (!%p120_p0), [#allocation3], %s125_s27  ;;  %s584_s3 = scalar_lea.vmem (!%p120_p0), [#allocation2], %s283_s28 }
  0x36   : > { %424 = dma.done.wait (%p528_p7), %s126_s2, 2048  }
  0x37   : > { %426 = vsyncadd (%p528_p7), %s126_s2, 4294965248  ;;  %p150_p11 = scmp.lt.s32.totalorder %s445_s10, 1  ;;  %p285_p10 = scmp.ne.s32.totalorder %s441_s9, 0 }
  0x38   : > { %vm158_vm0 = vcmask (!%p285_p10), 7168   ;;  %v460_v0 = vmov (!%p285_p10), 0.0  }
  0x39   : > { %s662_s10 = smov (!%p150_p11, %s445_s10), 1  ;;  %157 = sbr.rel (%p285_p10) target bundleno = 64 (0x40), region = 32 }
  0x3a   : > { %s284_s29 = sshll.u32 %s662_s10, 3 }
  0x3b   : > { %s595_s6 = scalar_lea.vmem %s642_s1, %s284_s29 }
  0x3c   : > { %159 = vst.msk [vmem:[%s595_s6] sm:$0xff] (!%p285_p10), %vm158_vm0, %v460_v0 }
  0x40 PF: > { %v161_v1 = vld [vmem:[%s584_s3] sm:$0xff]  ;;  %v162_v2 = vld [vmem:[%s584_s3 + $0x8] sm:$0xff]  ;;  %v163_v3 = vld [vmem:[%s584_s3 + $0x10] sm:$0xff]  ;;  %vm195_vm1 = vcmask 7168  }
  0x41   : > { %v177_v4 = vadd.f32 %v162_v2, %v161_v1  ;;  %v164_v5 = vld [vmem:[%s584_s3 + $0x18] sm:$0xff]  ;;  %v165_v7 = vld [vmem:[%s584_s3 + $0x20] sm:$0xff]  ;;  %v166_v9 = vld [vmem:[%s584_s3 + $0x28] sm:$0xff] }
  0x42   : > { %v167_v11 = vld [vmem:[%s584_s3 + $0x30] sm:$0xff]  ;;  %v168_v13 = vld [vmem:[%s584_s3 + $0x38] sm:$0xff]  ;;  %v169_v15 = vld [vmem:[%s584_s3 + $0x40] sm:$0xff] }
  0x43   : > { %v178_v6 = vadd.f32 %v177_v4, %v163_v3  ;;  %v170_v17 = vld [vmem:[%s584_s3 + $0x48] sm:$0xff]  ;;  %v171_v19 = vld [vmem:[%s584_s3 + $0x50] sm:$0xff]  ;;  %v172_v21 = vld [vmem:[%s584_s3 + $0x58] sm:$0xff] }
  0x44   : > { %v173_v23 = vld [vmem:[%s584_s3 + $0x60] sm:$0xff]  ;;  %v174_v25 = vld [vmem:[%s584_s3 + $0x68] sm:$0xff]  ;;  %v175_v27 = vld [vmem:[%s584_s3 + $0x70] sm:$0xff] }
  0x45   : > { %v179_v8 = vadd.f32 %v178_v6, %v164_v5  ;;  %v176_v29 = vld [vmem:[%s584_s3 + $0x78] sm:$0xff]  ;;  %v160_v32 = vld [vmem:[%s595_s6] sm:$0xff] }
  0x47   : > { %v180_v10 = vadd.f32 %v179_v8, %v165_v7 }
  0x49   : > { %v181_v12 = vadd.f32 %v180_v10, %v166_v9 }
  0x4b   : > { %v182_v14 = vadd.f32 %v181_v12, %v167_v11 }
  0x4d   : > { %v183_v16 = vadd.f32 %v182_v14, %v168_v13 }
  0x4f   : > { %v184_v18 = vadd.f32 %v183_v16, %v169_v15 }
  0x51   : > { %v185_v20 = vadd.f32 %v184_v18, %v170_v17 }
  0x53   : > { %v186_v22 = vadd.f32 %v185_v20, %v171_v19 }
  0x55   : > { %v187_v24 = vadd.f32 %v186_v22, %v172_v21 }
  0x57   : > { %v188_v26 = vadd.f32 %v187_v24, %v173_v23 }
  0x59   : > { %v189_v28 = vadd.f32 %v188_v26, %v174_v25 }
  0x5b   : > { %v190_v30 = vadd.f32 %v189_v28, %v175_v27 }
  0x5d   : > { %v191_v31 = vadd.f32 %v190_v30, %v176_v29 }
  0x5f   : > { %192 = vadd.xlane.f32.xlu0 %v191_v31 }
  0xec   : > { %v193_v33 = vpop.xlane.xlu0 %192 }
  0xed   : > { %v194_v34 = vadd.f32 %v193_v33, %v160_v32 }
  0xef   : > { %196 = vst.msk [vmem:[%s595_s6] sm:$0xff] %vm195_vm1, %v194_v34 }
  0xf0 PF: > { %s14_s13 = sadd.s32 1, %s457_s13   ;;  %s648_s6 = smov %s433_s7 }
  0xf1   : > { %p11_p7 = scmp.ge.s32.totalorder %s14_s13, 8   ;;  %s649_s7 = smov %s437_s8 }
  0xf2   : > { %s650_s8 = smov %s537_s30  ;;  %s651_s9 = smov %s449_s11 }
  0xf3   : > { %s652_s10 = smov %s453_s12  ;;  %s653_s11 = smov %s656_s15 }
  0xf4   : > { %s654_s12 = smov %s660_s16  ;;  %13 = sbr.rel (!%p11_p7) target bundleno = 5 (0x5), region = 68 }
  0xfb   :  { %216 = vsyncpa [#allocation3], 1 }
  0xfc   :  { %218 = vsyncpa [#allocation3 + $0x1], 1 }

</bundles_post_ra>
